<compile_context>
chip_gen: v6e
topology: v6e:2x2x1
jax: 0.10.0
libtpu: 0.0.40
codegen_flags: <defaults>
</compile_context>

<pallas_src>
import functools

import jax
import jax.numpy as jnp
import numpy as np
from jax.experimental import pallas as pl
from jax.experimental.pallas import tpu as pltpu

# --- small-but-consistent configuration (cfg_get(...) values) -----------------
FILTER_LENGTH = 256          # n_fft   (module default 1024, shrunk for a small demo)
HOP_LENGTH = 64              # hop_length
WIN_LENGTH = 256             # win_length (== n_fft, like the default config)
N_MELS = 32                  # n_mel_channels
MEL_FMIN = 0.0
MEL_FMAX = 8000.0
SAMPLING_RATE = 22050
NORMALIZED_STFT = False      # cfg 'normalize' default (torchaudio normalized=False)
TRUE_NORM = False            # cfg 'true_normalization' default
MEL_NORMS = None             # cfg 'mel_norm_file' default -> None (no torch.load)

MEL_MIN = -11.512925148010254
TORCH_MEL_MAX = 4.82

N_FREQ_FULL = FILTER_LENGTH // 2 + 1   # one-sided bins incl. Nyquist (129)
N_FREQ = FILTER_LENGTH // 2            # truncated: Nyquist bin has 0 mel weight (128)


# --- parameter construction (deterministic, matches torchaudio semantics) -----
def _hann_window_periodic(n):
    # torch.hann_window(win_length, periodic=True)
    i = np.arange(n, dtype=np.float64)
    return (0.5 - 0.5 * np.cos(2.0 * np.pi * i / n)).astype(np.float32)


def _dft_matrices(n_fft, n_freq):
    # Real/imag one-sided DFT: X[k] = sum_n x[n] (cos - i sin)(2 pi k n / N)
    n = np.arange(n_fft, dtype=np.float64)[:, None]
    k = np.arange(n_freq, dtype=np.float64)[None, :]
    ang = 2.0 * np.pi * n * k / n_fft
    return np.cos(ang).astype(np.float32), np.sin(ang).astype(np.float32)


def _melscale_fbanks_slaney_htk(n_freqs, f_min, f_max, n_mels, sample_rate):
    # torchaudio.functional.melscale_fbanks(..., norm='slaney', mel_scale='htk')
    def hz_to_mel(f):
        return 2595.0 * np.log10(1.0 + f / 700.0)

    def mel_to_hz(m):
        return 700.0 * (10.0 ** (m / 2595.0) - 1.0)

    all_freqs = np.linspace(0.0, sample_rate / 2.0, n_freqs)
    m_min, m_max = hz_to_mel(f_min), hz_to_mel(f_max)
    m_pts = np.linspace(m_min, m_max, n_mels + 2)
    f_pts = mel_to_hz(m_pts)

    f_diff = f_pts[1:] - f_pts[:-1]                      # (n_mels + 1,)
    slopes = f_pts[None, :] - all_freqs[:, None]         # (n_freqs, n_mels + 2)
    down_slopes = (-1.0 * slopes[:, :-2]) / f_diff[:-1]  # (n_freqs, n_mels)
    up_slopes = slopes[:, 2:] / f_diff[1:]               # (n_freqs, n_mels)
    fb = np.maximum(0.0, np.minimum(down_slopes, up_slopes))

    # slaney normalization (area normalization)
    enorm = 2.0 / (f_pts[2: n_mels + 2] - f_pts[:n_mels])
    fb = fb * enorm[None, :]
    return fb.astype(np.float32)                         # (n_freqs, n_mels)


def _build_constants():
    """Windowed, fused cos|sin DFT operand and truncated mel filterbank."""
    assert WIN_LENGTH == FILTER_LENGTH, "win_length must equal n_fft in this config"
    assert FILTER_LENGTH % HOP_LENGTH == 0, "n_fft must be a multiple of hop_length"
    win = _hann_window_periodic(WIN_LENGTH)                        # (n_fft,)
    cos_f, sin_f = _dft_matrices(FILTER_LENGTH, N_FREQ_FULL)       # (n_fft, 129)
    fb_full = _melscale_fbanks_slaney_htk(
        N_FREQ_FULL, MEL_FMIN, MEL_FMAX, N_MELS, SAMPLING_RATE)    # (129, n_mels)
    # Truncating to N_FREQ is exact only if the dropped bins carry zero mel weight.
    assert np.all(fb_full[N_FREQ:, :] == 0.0), \
        "mel_fmax too high for the N_FREQ truncation"
    cs = np.concatenate([cos_f[:, :N_FREQ], sin_f[:, :N_FREQ]], axis=1)  # (n_fft, 2NF)
    cs = (win[:, None] * cs).astype(np.float32)    # fold Hann window into the DFT
    fb = np.ascontiguousarray(fb_full[:N_FREQ, :]).astype(np.float32)   # (NF, n_mels)
    return jnp.asarray(cs), jnp.asarray(fb)


# --- Pallas kernel -------------------------------------------------------------
def _mel_kernel(win_ref, cs_ref, fb_ref, out_ref,
                frames_scr, y_scr, power_scr,
                *, tf, hop, ratio, nf, true_norm):
    # win_ref:    (tf + 8, hop)   overlapping chunk-row window for this frame tile
    # cs_ref:     (n_fft, 2*NF)   Hann-windowed fused cos|sin DFT operand
    # fb_ref:     (NF, M)         slaney mel filterbank (Nyquist-truncated)
    # out_ref:    (M, tf)         lane-dense, already transposed output tile
    # frames_scr: (tf, n_fft)     assembled frame tile        (VMEM scratch)
    # y_scr:      (tf, 2*NF)      re|im STFT                  (VMEM scratch)
    # power_scr:  (tf, NF)        |STFT|^2                    (VMEM scratch)

    # 1) Assemble the windowed-frame tile: frame t = window rows [t, t+ratio).
    #    Reads are static sublane-shifted views of the per-tile window block;
    #    stores are grouped into 128-lane-aligned column pairs -> unmasked vst.
    if 2 * hop == 128 and ratio % 2 == 0:
        for k in range(0, ratio, 2):                         # static, unrolled
            pair = jnp.concatenate(
                [win_ref[pl.ds(k, tf), :], win_ref[pl.ds(k + 1, tf), :]], axis=1)
            frames_scr[:, k * hop:(k + 2) * hop] = pair      # (tf, 128), aligned
    else:
        for k in range(ratio):                               # generic fallback
            frames_scr[:, k * hop:(k + 1) * hop] = win_ref[pl.ds(k, tf), :]

    # 2) Single K=n_fft, N=2*NF STFT matmul: full MXU width, one weight push,
    #    no per-k accumulation adds.  Result staged in VMEM, not 128 live vregs.
    y_scr[...] = jnp.dot(frames_scr[...], cs_ref[...],
                         preferred_element_type=jnp.float32)

    # 3) Power spectrum |re + i*im|^2 (power=2), lane-aligned slices of y_scr.
    re = y_scr[:, :nf]
    im = y_scr[:, nf:]
    power_scr[...] = re * re + im * im

    # 4) Mel projection, small (tf, M)->(M, tf) transpose (XLU is idle here),
    #    log-clamp and optional true normalization; lane-dense store.
    mel = jnp.dot(power_scr[...], fb_ref[...],
                  preferred_element_type=jnp.float32)        # (tf, M)
    mel_t = jnp.transpose(mel)                               # (M, tf)
    mel_t = jnp.log(jnp.maximum(mel_t, 1e-5))
    if true_norm:
        mel_t = 2.0 * ((mel_t - MEL_MIN) / (TORCH_MEL_MAX - MEL_MIN)) - 1.0
    out_ref[...] = mel_t


def _round_up(x, m):
    return ((x + m - 1) // m) * m


def torch_mel_spectrogram(audio, *, max_frame_tile=512):
    """audio: (B, T) or (B, 1, T) float32 -> mel: (B, n_mels, n_frames) float32."""
    if audio.ndim == 3:
        audio = jnp.squeeze(audio, axis=1)
    assert audio.ndim == 2
    audio = audio.astype(jnp.float32)
    B, T = audio.shape

    # center=True reflect padding (same as torchaudio.MelSpectrogram / torch.stft).
    pad = FILTER_LENGTH // 2
    xp = jnp.pad(audio, ((0, 0), (pad, pad)), mode="reflect")
    n_frames = 1 + T // HOP_LENGTH
    ratio = FILTER_LENGTH // HOP_LENGTH             # frames advance by 1 chunk row

    # Adaptive frame tile (review item 1): large enough to amortize the ~0.35us
    # per-grid-step overhead; all per-tile buffers stay ~1-2 MB even at tf=512.
    tf = min(max_frame_tile, _round_up(n_frames, 128))
    n_frames_pad = _round_up(n_frames, tf)
    n_tiles = n_frames_pad // tf

    extra = 8                                       # >= ratio-1, multiple of 8
    n_chunks = n_frames_pad + extra
    total = n_chunks * HOP_LENGTH
    if total > xp.shape[1]:
        xp = jnp.pad(xp, ((0, 0), (0, total - xp.shape[1])))
    else:
        xp = xp[:, :total]                          # never reached for this config
    chunks = xp.reshape(B, n_chunks, HOP_LENGTH)    # (B, n_chunks, hop)

    # Overlapping per-tile chunk windows: tile f needs rows [f*tf, f*tf+tf+ratio-1).
    # Only `extra` rows per tile are duplicated (<2% HBM overhead), the kernel's
    # VMEM working set becomes O(tile) instead of O(clip length), and every
    # in-kernel slice starts at a static, block-local offset.
    row_idx = (np.arange(n_tiles, dtype=np.int32)[:, None] * tf
               + np.arange(tf + extra, dtype=np.int32)[None, :])
    windows = chunks[:, row_idx, :]                 # (B, n_tiles, tf+extra, hop)

    cs, fb = _build_constants()

    kernel = functools.partial(
        _mel_kernel, tf=tf, hop=HOP_LENGTH, ratio=ratio, nf=N_FREQ,
        true_norm=TRUE_NORM)

    out = pl.pallas_call(
        kernel,
        out_shape=jax.ShapeDtypeStruct((B, N_MELS, n_frames_pad), jnp.float32),
        grid_spec=pltpu.PrefetchScalarGridSpec(
            num_scalar_prefetch=0,
            grid=(B, n_tiles),
            in_specs=[
                # Per-tile chunk window: one ~(tf+8)*hop*4-byte DMA per grid step.
                pl.BlockSpec((None, None, tf + extra, HOP_LENGTH),
                             lambda b, f: (b, f, 0, 0)),
                # Grid-invariant constants (small; default double-buffering is
                # < 0.6 MB, so pl.Buffered(1) is not worth the risk here).
                pl.BlockSpec((FILTER_LENGTH, 2 * N_FREQ), lambda b, f: (0, 0)),
                pl.BlockSpec((N_FREQ, N_MELS), lambda b, f: (0, 0)),
            ],
            out_specs=pl.BlockSpec((None, N_MELS, tf), lambda b, f: (b, 0, f)),
            scratch_shapes=[
                pltpu.VMEM((tf, FILTER_LENGTH), jnp.float32),   # frame tile
                pltpu.VMEM((tf, 2 * N_FREQ), jnp.float32),      # re|im STFT
                pltpu.VMEM((tf, N_FREQ), jnp.float32),          # power spectrum
            ]),
        compiler_params=pltpu.CompilerParams(
            dimension_semantics=("parallel", "parallel"),
            vmem_limit_bytes=32 * 1024 * 1024),
    )(windows, cs, fb)

    # MEL_NORMS is None for the default config (no mel_norm_file).
    # TODO(synk): if a mel_norm_file were provided, divide by mel_norms[None, :, None].
    return out[:, :, :n_frames]


# --- pure-JAX reference (straightforward full-NF math) for a sanity check ------
def _reference(audio):
    if audio.ndim == 3:
        audio = jnp.squeeze(audio, axis=1)
    x = audio.astype(jnp.float32)
    B, T = x.shape
    pad = FILTER_LENGTH // 2
    xp = jnp.pad(x, ((0, 0), (pad, pad)), mode="reflect")
    n_frames = 1 + T // HOP_LENGTH
    idx = (jnp.arange(n_frames)[:, None] * HOP_LENGTH
           + jnp.arange(FILTER_LENGTH)[None, :])
    frames = xp[:, idx]                                        # (B, n_frames, n_fft)

    win = jnp.asarray(_hann_window_periodic(WIN_LENGTH))
    cos_f, sin_f = _dft_matrices(FILTER_LENGTH, N_FREQ_FULL)
    fb_full = jnp.asarray(_melscale_fbanks_slaney_htk(
        N_FREQ_FULL, MEL_FMIN, MEL_FMAX, N_MELS, SAMPLING_RATE))

    xw = frames * win[None, None, :]
    re = jnp.einsum("btn,nf->btf", xw, jnp.asarray(cos_f))
    im = jnp.einsum("btn,nf->btf", xw, jnp.asarray(sin_f))
    power = re * re + im * im
    mel = jnp.einsum("btf,fm->btm", power, fb_full)
    mel = jnp.log(jnp.maximum(mel, 1e-5))
    if TRUE_NORM:
        mel = 2.0 * ((mel - MEL_MIN) / (TORCH_MEL_MAX - MEL_MIN)) - 1.0
    return jnp.transpose(mel, (0, 2, 1))                       # (B, n_mels, n_frames)


if __name__ == "__main__":
    key = jax.random.PRNGKey(0)
    B, T = 2, 1024                                  # small audio clip
    audio = jax.random.normal(key, (B, T), dtype=jnp.float32)

    mel = jax.block_until_ready(torch_mel_spectrogram(audio))
    ref = jax.block_until_ready(_reference(audio))

    assert mel.shape == (B, N_MELS, 1 + T // HOP_LENGTH), mel.shape
    np.testing.assert_allclose(np.asarray(mel), np.asarray(ref),
                               rtol=2e-3, atol=2e-3)
    print("KERNEL_OK")
</pallas_src>

<mosaic_0001>
module attributes {stable_mosaic.version = 11 : i64} {
  func.func @_mel_kernel(%arg0: i32, %arg1: i32, %arg2: memref<1x1x136x64xf32, #tpu.memory_space<vmem>>, %arg3: memref<256x256xf32, #tpu.memory_space<vmem>>, %arg4: memref<128x32xf32, #tpu.memory_space<vmem>>, %arg5: memref<1x32x128xf32, #tpu.memory_space<vmem>>, %arg6: memref<128x256xf32, #tpu.memory_space<vmem>>, %arg7: memref<128x256xf32, #tpu.memory_space<vmem>>, %arg8: memref<128x128xf32, #tpu.memory_space<vmem>>) attributes {dimension_semantics = [#tpu.dimension_semantics<parallel>, #tpu.dimension_semantics<parallel>], iteration_bounds = array<i64: 2, 1>, scalar_prefetch = 0 : i64, scratch_operands = 3 : i64, tpu.core_type = #tpu.core_type<tc>, window_params = [{transform_indices = @transform_0, window_bounds = array<i64: 1, 1, 136, 64>}, {pipeline_mode = #tpu.pipeline_mode<synchronous>, transform_indices = @transform_1, window_bounds = array<i64: 256, 256>}, {pipeline_mode = #tpu.pipeline_mode<synchronous>, transform_indices = @transform_2, window_bounds = array<i64: 128, 32>}, {transform_indices = @transform_3, window_bounds = array<i64: 1, 32, 128>}]} {
    %c0 = arith.constant 0 : index
    %c0_0 = arith.constant 0 : index
    %c0_1 = arith.constant 0 : index
    %c0_2 = arith.constant 0 : index
    %0 = vector.load %arg2[%c0, %c0_0, %c0_1, %c0_2] : memref<1x1x136x64xf32, #tpu.memory_space<vmem>>, vector<1x1x128x64xf32>
    %1 = vector.shape_cast %0 : vector<1x1x128x64xf32> to vector<128x64xf32>
    %c0_3 = arith.constant 0 : index
    %c0_4 = arith.constant 0 : index
    %c1 = arith.constant 1 : index
    %c0_5 = arith.constant 0 : index
    %2 = vector.load %arg2[%c0_3, %c0_4, %c1, %c0_5] : memref<1x1x136x64xf32, #tpu.memory_space<vmem>>, vector<1x1x128x64xf32>
    %3 = vector.shape_cast %2 : vector<1x1x128x64xf32> to vector<128x64xf32>
    %4 = tpu.concatenate %1, %3 in 1 : vector<128x64xf32>, vector<128x64xf32> -> vector<128x128xf32>
    %c0_6 = arith.constant 0 : index
    %c0_7 = arith.constant 0 : index
    %5 = vector.load %arg6[%c0_6, %c0_7] : memref<128x256xf32, #tpu.memory_space<vmem>>, vector<128x128xf32>
    tpu.vector_store %arg6[%c0_6, %c0_7], %4 {strides = array<i32>} : memref<128x256xf32, #tpu.memory_space<vmem>>, vector<128x128xf32>,
    %c0_8 = arith.constant 0 : index
    %c0_9 = arith.constant 0 : index
    %c2 = arith.constant 2 : index
    %c0_10 = arith.constant 0 : index
    %6 = vector.load %arg2[%c0_8, %c0_9, %c2, %c0_10] : memref<1x1x136x64xf32, #tpu.memory_space<vmem>>, vector<1x1x128x64xf32>
    %7 = vector.shape_cast %6 : vector<1x1x128x64xf32> to vector<128x64xf32>
    %c0_11 = arith.constant 0 : index
    %c0_12 = arith.constant 0 : index
    %c3 = arith.constant 3 : index
    %c0_13 = arith.constant 0 : index
    %8 = vector.load %arg2[%c0_11, %c0_12, %c3, %c0_13] : memref<1x1x136x64xf32, #tpu.memory_space<vmem>>, vector<1x1x128x64xf32>
    %9 = vector.shape_cast %8 : vector<1x1x128x64xf32> to vector<128x64xf32>
    %10 = tpu.concatenate %7, %9 in 1 : vector<128x64xf32>, vector<128x64xf32> -> vector<128x128xf32>
    %c0_14 = arith.constant 0 : index
    %c128 = arith.constant 128 : index
    %11 = vector.load %arg6[%c0_14, %c128] : memref<128x256xf32, #tpu.memory_space<vmem>>, vector<128x128xf32>
    tpu.vector_store %arg6[%c0_14, %c128], %10 {strides = array<i32>} : memref<128x256xf32, #tpu.memory_space<vmem>>, vector<128x128xf32>,
    %c0_15 = arith.constant 0 : index
    %c0_16 = arith.constant 0 : index
    %12 = vector.load %arg6[%c0_15, %c0_16] : memref<128x256xf32, #tpu.memory_space<vmem>>, vector<128x256xf32>
    %c0_17 = arith.constant 0 : index
    %c0_18 = arith.constant 0 : index
    %13 = vector.load %arg3[%c0_17, %c0_18] : memref<256x256xf32, #tpu.memory_space<vmem>>, vector<256x256xf32>
    %cst = arith.constant dense<0.000000e+00> : vector<128x256xf32>
    %14 = tpu.matmul %12, %13, %cst {dimension_numbers = #tpu.dot_dimension_numbers<[1], [0], [0], [1], [0, 0, 1, 1], [], []>} : vector<128x256xf32>, vector<256x256xf32>, vector<128x256xf32> -> vector<128x256xf32>
    %c0_19 = arith.constant 0 : index
    %c0_20 = arith.constant 0 : index
    %15 = vector.load %arg7[%c0_19, %c0_20] : memref<128x256xf32, #tpu.memory_space<vmem>>, vector<128x256xf32>
    tpu.vector_store %arg7[%c0_19, %c0_20], %14 {strides = array<i32>} : memref<128x256xf32, #tpu.memory_space<vmem>>, vector<128x256xf32>,
    %c0_21 = arith.constant 0 : index
    %c0_22 = arith.constant 0 : index
    %16 = vector.load %arg7[%c0_21, %c0_22] : memref<128x256xf32, #tpu.memory_space<vmem>>, vector<128x128xf32>
    %c0_23 = arith.constant 0 : index
    %c128_24 = arith.constant 128 : index
    %17 = vector.load %arg7[%c0_23, %c128_24] : memref<128x256xf32, #tpu.memory_space<vmem>>, vector<128x128xf32>
    %18 = arith.mulf %16, %16 : vector<128x128xf32>
    %19 = arith.mulf %17, %17 : vector<128x128xf32>
    %20 = arith.addf %18, %19 : vector<128x128xf32>
    %c0_25 = arith.constant 0 : index
    %c0_26 = arith.constant 0 : index
    %21 = vector.load %arg8[%c0_25, %c0_26] : memref<128x128xf32, #tpu.memory_space<vmem>>, vector<128x128xf32>
    tpu.vector_store %arg8[%c0_25, %c0_26], %20 {strides = array<i32>} : memref<128x128xf32, #tpu.memory_space<vmem>>, vector<128x128xf32>,
    %c0_27 = arith.constant 0 : index
    %c0_28 = arith.constant 0 : index
    %22 = vector.load %arg8[%c0_27, %c0_28] : memref<128x128xf32, #tpu.memory_space<vmem>>, vector<128x128xf32>
    %c0_29 = arith.constant 0 : index
    %c0_30 = arith.constant 0 : index
    %23 = vector.load %arg4[%c0_29, %c0_30] : memref<128x32xf32, #tpu.memory_space<vmem>>, vector<128x32xf32>
    %cst_31 = arith.constant dense<0.000000e+00> : vector<128x32xf32>
    %24 = tpu.matmul %22, %23, %cst_31 {dimension_numbers = #tpu.dot_dimension_numbers<[1], [0], [0], [1], [0, 0, 1, 1], [], []>} : vector<128x128xf32>, vector<128x32xf32>, vector<128x32xf32> -> vector<128x32xf32>
    %25 = tpu.transpose %24, [1, 0] : vector<128x32xf32> -> vector<32x128xf32>
    %cst_32 = arith.constant 9.99999974E-6 : f32
    %26 = vector.broadcast %cst_32 : f32 to vector<32x128xf32>
    %27 = arith.maximumf %25, %26 : vector<32x128xf32>
    %28 = math.log %27 : vector<32x128xf32>
    %c0_33 = arith.constant 0 : index
    %c0_34 = arith.constant 0 : index
    %c0_35 = arith.constant 0 : index
    %29 = vector.load %arg5[%c0_33, %c0_34, %c0_35] : memref<1x32x128xf32, #tpu.memory_space<vmem>>, vector<1x32x128xf32>
    %30 = vector.shape_cast %29 : vector<1x32x128xf32> to vector<32x128xf32>
    %31 = vector.shape_cast %28 : vector<32x128xf32> to vector<1x32x128xf32>
    tpu.vector_store %arg5[%c0_33, %c0_34, %c0_35], %31 {strides = array<i32>} : memref<1x32x128xf32, #tpu.memory_space<vmem>>, vector<1x32x128xf32>,
    return
  }
  func.func @transform_0(%arg0: i32, %arg1: i32) -> (i32, i32, i32, i32) {
    %c0_i32 = arith.constant 0 : i32
    %c0_i32_0 = arith.constant 0 : i32
    %c0_i32_1 = arith.constant 0 : i32
    return %arg0, %arg1, %c0_i32, %c0_i32_0 : i32, i32, i32, i32
  }
  func.func @transform_1(%arg0: i32, %arg1: i32) -> (i32, i32) {
    %c0_i32 = arith.constant 0 : i32
    %c0_i32_0 = arith.constant 0 : i32
    %c0_i32_1 = arith.constant 0 : i32
    return %c0_i32, %c0_i32_0 : i32, i32
  }
  func.func @transform_2(%arg0: i32, %arg1: i32) -> (i32, i32) {
    %c0_i32 = arith.constant 0 : i32
    %c0_i32_0 = arith.constant 0 : i32
    %c0_i32_1 = arith.constant 0 : i32
    return %c0_i32, %c0_i32_0 : i32, i32
  }
  func.func @transform_3(%arg0: i32, %arg1: i32) -> (i32, i32, i32) {
    %c0_i32 = arith.constant 0 : i32
    %c0_i32_0 = arith.constant 0 : i32
    return %arg0, %c0_i32, %arg1 : i32, i32, i32
  }
}

</mosaic_0001>

<bundles_post_ra>
// kernel: tpu_custom_call.1
= control target key start
LH: loop header
LB: loop body
LE: loop exit
PB: predicated region body
PF: predicated region fallthrough
CT: control target
= control target key end

     0   :  { %8 = vsyncpa [#allocation6], 0  ;;  %s1978_s0 = inlined_call_operand.vmem [shape: f32[2,1,136,64], index: 0, kind: input, shape index: {}]   ;;  %s1979_s1 = inlined_call_operand.vmem [shape: f32[256,256], index: 1, kind: input, shape index: {}]   ;;  %s1980_s2 = inlined_call_operand.vmem [shape: f32[128,32], index: 2, kind: input, shape index: {}]   ;;  %s1981_s3 = inlined_call_operand.hbm [shape: f32[2,32,128], index: 3, kind: output, shape index: {}]  }
   0x1   :  { %10 = vsyncpa [#allocation6 + $0x1], 0  ;;  %s1510_s12 = smov 0   ;;  %s1512_s13 = smov 0  }
   0x2   :  { %s1514_s14 = smov 0   ;;  %s1516_s15 = smov 0  }
   0x3   :  { %s1518_s16 = smov 0   ;;  %s1520_s17 = smov 0  }
   0x4 LB: > { %s1160_s18 = sadd.s32 4294967295, %s1484_s17   ;;  %s1161_s19 = sadd.s32 4294967294, %s1484_s17   ;;  %s1484_s17 = sphi %s1520_s17, %s16_s17   ;;  %s1480_s16 = sphi %s1518_s16, %s1988_s16   ;;  %s1476_s15 = sphi %s1516_s15, %s1987_s15   ;;  %s1472_s14 = sphi %s1514_s14, %s1986_s14   ;;  %s1468_s13 = sphi %s1512_s13, %s1985_s13   ;;  %s1464_s12 = sphi %s1510_s12, %s1984_s12  }
   0x5   : > { %s28_s20 = sadd.s32 1, %s1480_s16  ;;  %s107_s21 = sadd.s32 1, %s1472_s14 }
   0x6   : > { %p30_p0 = scmp.ge.s32.totalorder %s28_s20, 2  ;;  %p117_p1 = scmp.ne.s32.totalorder %s1472_s14, %s1468_s13 }
   0x7   : > { %p118_p2 = scmp.eq.s32.totalorder %s1160_s18, 1  ;;  %p123_p3 = scmp.ne.s32.totalorder %s1468_s13, %s1464_s12 }
   0x8   : > { %s1990_s20 = smov (%p30_p0, %s28_s20), 0  ;;  %p124_p5 = scmp.eq.s32.totalorder %s1161_s19, 1 }
   0x9   : > { %p1550_p4 = por %p118_p2, %p117_p1  ;;  %s102_s23 = ssub.s32 %s1480_s16, %s1990_s20 }
   0xa   : > { %p1164_p6 = scmp.ge.s32.totalorder %s1484_s17, 1  ;;  %p105_p7 = scmp.eq.s32.totalorder %s102_s23, 0 }
   0xb   : > { %p1557_p8 = por %p124_p5, %p123_p3  ;;  %p160_p9 = scmp.lt.s32.totalorder %s1484_s17, 3 }
   0xc   : > { %s1563_s25 = scalar_select %p105_p7, %s1472_s14, %s107_s21  }
   0xd   : > { %p161_p10 = pnand %p1164_p6, %p160_p9 }
   0xe   : > { %p188_p11 = scmp.lt.s32.totalorder (!%p161_p10), %s1476_s15, 1  ;;  %s1486_s11 = smov (!%p161_p10), 64  }
   0xf   : > { %164 = sbr.rel (%p161_p10) target bundleno = 715 (0x2cb), region = 32  ;;  %s185_s6 = sand.u32 (!%p161_p10), 1, %s1468_s13  }
  0x10   : > { %s1172_s10 = sshll.u32 (!%p161_p10), %s1476_s15, 9  ;;  %s1933_s23 = scalar_lea.sflag (!%p161_p10), [#allocation6], %s185_s6 }
  0x11   : > { %s1931_s21 = scalar_lea.hbm (!%p161_p10), %s1981_s3, %s1172_s10 }
  0x14   : > { %v517_v0 = vld [vmem:[%s1979_s1 + $0xf8] sm:$0xff]  ;;  %v516_v1 = vld [vmem:[%s1979_s1 + $0xf0] sm:$0xff]  ;;  %v515_v2 = vld [vmem:[%s1979_s1 + $0xe8] sm:$0xff]  ;;  %s189_s7 = scalar_select %p188_p11, %s1476_s15, 1  ;;  %vm293_vm0 = vcmask 523264  }
  0x15   : > { %550 = vmatprep.subr.mxu0 %v517_v0  ;;  %v514_v3 = vld [vmem:[%s1979_s1 + $0xe0] sm:$0xff]  ;;  %v513_v4 = vld [vmem:[%s1979_s1 + $0xd8] sm:$0xff]  ;;  %v512_v5 = vld [vmem:[%s1979_s1 + $0xd0] sm:$0xff]  ;;  %s1487_s15 = smov [#allocation5]  }
  0x16   : > { %551 = vmatpush1.msra.mxu0 %v516_v1  ;;  %s1261_s18 = smul.u32 136, %s189_s7  ;;  %v511_v6 = vld [vmem:[%s1979_s1 + $0xc8] sm:$0xff]  ;;  %v510_v7 = vld [vmem:[%s1979_s1 + $0xc0] sm:$0xff]  ;;  %v509_v8 = vld [vmem:[%s1979_s1 + $0xb8] sm:$0xff]  ;;  %s1165_s7 = sshll.u32 %s185_s6, 5 }
  0x17   : > { %552 = vmatprep.subr.mxu0 %v515_v2  ;;  %v508_v9 = vld [vmem:[%s1979_s1 + $0xb0] sm:$0xff]  ;;  %v507_v10 = vld [vmem:[%s1979_s1 + $0xa8] sm:$0xff]  ;;  %v506_v21 = vld [vmem:[%s1979_s1 + $0xa0] sm:$0xff]  ;;  %s187_s8 = scalar_lea.vmem [#allocation5], %s1165_s7  ;;  %s1412_s27 = sshll.u32 %s1487_s15, 4  ;;  %s1413_s27 = int_to_ptr.vmem [resolvable:$false] %s1412_s27 }
  0x18   : > { %553 = vmatpush1.msra.mxu0 %v514_v3  ;;  %s1594_s29 = scalar_lea.vmem %s1978_s0, %s1261_s18  ;;  %v505_v23 = vld [vmem:[%s1979_s1 + $0x98] sm:$0xff]  ;;  %v504_v27 = vld [vmem:[%s1979_s1 + $0x90] sm:$0xff]  ;;  %v503_v30 = vld [vmem:[%s1979_s1 + $0x88] sm:$0xff]  ;;  %s1079_s9 = sshll.u32 %s187_s8, 4  ;;  %s1926_s9 = int_to_ptr.vmem [resolvable:$true] %s1079_s9 }
  0x19   : > { %554 = vmatprep.subr.mxu0 %v513_v4  ;;  %v213_v11 = vld [vmem:[%s1594_s29 + $0x1] sm:$0xff]  ;;  %v214_v13 = vld [vmem:[%s1594_s29 + $0x9] sm:$0xff]  ;;  %v215_v16 = vld [vmem:[%s1594_s29 + $0x11] sm:$0xff]  ;;  %s1408_s26 = scalar_lea.vmem %s1926_s9, 512  ;;  %p1415_p1 = scmp.lt.s32.totalorder %s1926_s9, %s1413_s27 }
  0x1a   : > { %555 = vmatpush1.msra.mxu0 %v512_v5  ;;  %v342_v12 = vld [vmem:[%s1594_s29 + $0x3] sm:$0xff]  ;;  %v343_v15 = vld [vmem:[%s1594_s29 + $0xb] sm:$0xff]  ;;  %v344_v17 = vld [vmem:[%s1594_s29 + $0x13] sm:$0xff]  ;;  %p1409_p12 = scmp.ne.s32.totalorder %s1926_s9, %s1408_s26 }
  0x1b   : > { %556 = vmatprep.subr.mxu0 %v511_v6  ;;  %v1320_v14 = vpack.i.bf16 %v213_v11, %v342_v12  ;;  %v1330_v18 = vpack.i.bf16 %v215_v16, %v344_v17  ;;  %v216_v19 = vld [vmem:[%s1594_s29 + $0x19] sm:$0xff]  ;;  %v1325_v22 = vpack.i.bf16 %v214_v13, %v343_v15  ;;  %v217_v25 = vld [vmem:[%s1594_s29 + $0x21] sm:$0xff]  ;;  %v218_v28 = vld [vmem:[%s1594_s29 + $0x29] sm:$0xff] }
  0x1c   : > { %557 = vmatpush1.msra.mxu0 %v510_v7  ;;  %v345_v20 = vld [vmem:[%s1594_s29 + $0x1b] sm:$0xff]  ;;  %v346_v26 = vld [vmem:[%s1594_s29 + $0x23] sm:$0xff]  ;;  %v347_v29 = vld [vmem:[%s1594_s29 + $0x2b] sm:$0xff]  ;;  %p1410_p13 = pnand %p1409_p12, %p1550_p4 }
  0x1d   : > { %558 = vmatprep.subr.mxu0 %v509_v8  ;;  %1321 = vrot.lane.b32.xlu0 %v1320_v14, %s1486_s11  ;;  %v1335_v24 = vpack.i.bf16 %v216_v19, %v345_v20  ;;  %v502_v31 = vld [vmem:[%s1979_s1 + $0x80] sm:$0xff]  ;;  %v1340_v32 = vpack.i.bf16 %v217_v25, %v346_v26  ;;  %v501_v33 = vld [vmem:[%s1979_s1 + $0x78] sm:$0xff]  ;;  %v1345_v34 = vpack.i.bf16 %v218_v28, %v347_v29  ;;  %v500_v37 = vld [vmem:[%s1979_s1 + $0x70] sm:$0xff] }
  0x1e   : > { %559 = vmatpush1.msra.mxu0 %v508_v9  ;;  %1331 = vrot.lane.b32.xlu1 %v1330_v18, %s1486_s11  ;;  %v219_v35 = vld [vmem:[%s1594_s29 + $0x31] sm:$0xff]  ;;  %v220_v38 = vld [vmem:[%s1594_s29 + $0x39] sm:$0xff]  ;;  %v499_v40 = vld [vmem:[%s1979_s1 + $0x68] sm:$0xff]  ;;  %p1411_p0 = pneg %p1410_p13 }
  0x1f   : > { %560 = vmatprep.subr.mxu0 %v507_v10  ;;  %v348_v36 = vld [vmem:[%s1594_s29 + $0x33] sm:$0xff]  ;;  %v349_v39 = vld [vmem:[%s1594_s29 + $0x3b] sm:$0xff]  ;;  %v350_v46 = vld [vmem:[%s1594_s29 + $0x43] sm:$0xff] }
  0x20   : > { %561 = vmatpush1.msra.mxu0 %v506_v21  ;;  %v498_v41 = vld [vmem:[%s1979_s1 + $0x60] sm:$0xff]  ;;  %v1350_v42 = vpack.i.bf16 %v219_v35, %v348_v36  ;;  %v497_v43 = vld [vmem:[%s1979_s1 + $0x58] sm:$0xff]  ;;  %v1355_v44 = vpack.i.bf16 %v220_v38, %v349_v39  ;;  %v496_v47 = vld [vmem:[%s1979_s1 + $0x50] sm:$0xff] }
  0x21   : > { %562 = vmatprep.subr.mxu0 %v505_v23  ;;  %1326 = vrot.lane.b32.xlu0 %v1325_v22, %s1486_s11  ;;  %v221_v45 = vld [vmem:[%s1594_s29 + $0x41] sm:$0xff]  ;;  %v222_v48 = vld [vmem:[%s1594_s29 + $0x49] sm:$0xff]  ;;  %v493_v53 = vld [vmem:[%s1979_s1 + $0x38] sm:$0xff] }
  0x22   : > { %563 = vmatpush1.msra.mxu0 %v504_v27  ;;  %1336 = vrot.lane.b32.xlu1 %v1335_v24, %s1486_s11  ;;  %v351_v49 = vld [vmem:[%s1594_s29 + $0x4b] sm:$0xff]  ;;  %v494_v51 = vld [vmem:[%s1979_s1 + $0x40] sm:$0xff]  ;;  %v1360_v52 = vpack.i.bf16 %v221_v45, %v350_v46  ;;  %v352_v56 = vld [vmem:[%s1594_s29 + $0x53] sm:$0xff] }
  0x23   : > { %564 = vmatprep.subr.mxu0 %v503_v30  ;;  %v495_v50 = vld [vmem:[%s1979_s1 + $0x48] sm:$0xff]  ;;  %v1365_v54 = vpack.i.bf16 %v222_v48, %v351_v49  ;;  %v223_v55 = vld [vmem:[%s1594_s29 + $0x51] sm:$0xff]  ;;  %v224_v58 = vld [vmem:[%s1594_s29 + $0x59] sm:$0xff] }
  0x24   : > { %565 = vmatpush1.msra.mxu0 %v502_v31  ;;  %v492_v57 = vld [vmem:[%s1979_s1 + $0x30] sm:$0xff]  ;;  %v353_v59 = vld [vmem:[%s1594_s29 + $0x5b] sm:$0xff]  ;;  %v491_v60 = vld [vmem:[%s1979_s1 + $0x28] sm:$0xff]  ;;  %v1370_v62 = vpack.i.bf16 %v223_v55, %v352_v56 }
  0x25   : > { %566 = vmatprep.subr.mxu0 %v501_v33  ;;  %1341 = vrot.lane.b32.xlu0 %v1340_v32, %s1486_s11  ;;  %v490_v61 = vld [vmem:[%s1979_s1 + $0x20] sm:$0xff]  ;;  %v489_v63 = vld [vmem:[%s1979_s1 + $0x18] sm:$0xff]  ;;  %v1375_v0 = vpack.i.bf16 %v224_v58, %v353_v59  ;;  %v488_v3 = vld [vmem:[%s1979_s1 + $0x10] sm:$0xff] }
  0x26   : > { %567 = vmatpush1.msra.mxu0 %v500_v37  ;;  %1346 = vrot.lane.b32.xlu1 %v1345_v34, %s1486_s11  ;;  %v225_v1 = vld [vmem:[%s1594_s29 + $0x61] sm:$0xff]  ;;  %v226_v4 = vld [vmem:[%s1594_s29 + $0x69] sm:$0xff]  ;;  %v549_v9 = vld [vmem:[%s1979_s1 + $0x1f8] sm:$0xff] }
  0x27   : > { %568 = vmatprep.subr.mxu0 %v499_v40  ;;  %v354_v2 = vld [vmem:[%s1594_s29 + $0x63] sm:$0xff]  ;;  %v355_v5 = vld [vmem:[%s1594_s29 + $0x6b] sm:$0xff]  ;;  %v356_v12 = vld [vmem:[%s1594_s29 + $0x73] sm:$0xff] }
  0x28   : > { %569 = vmatpush1.msra.mxu0 %v498_v41  ;;  %v487_v6 = vld [vmem:[%s1979_s1 + $0x8] sm:$0xff]  ;;  %v486_v7 = vld [vmem:[%s1979_s1] sm:$0xff]  ;;  %v1380_v8 = vpack.i.bf16 %v225_v1, %v354_v2  ;;  %v1385_v10 = vpack.i.bf16 %v226_v4, %v355_v5  ;;  %v227_v11 = vld [vmem:[%s1594_s29 + $0x71] sm:$0xff] }
  0x29   : > { %570 = vmatprep.subr.mxu0 %v497_v43  ;;  %1351 = vrot.lane.b32.xlu0 %v1350_v42, %s1486_s11  ;;  %v548_v13 = vld [vmem:[%s1979_s1 + $0x1f0] sm:$0xff]  ;;  %v228_v14 = vld [vmem:[%s1594_s29 + $0x79] sm:$0xff]  ;;  %v547_v16 = vld [vmem:[%s1979_s1 + $0x1e8] sm:$0xff]  ;;  %v1390_v18 = vpack.i.bf16 %v227_v11, %v356_v12 }
  0x2a   : > { %571 = vmatpush1.msra.mxu0 %v496_v47  ;;  %1356 = vrot.lane.b32.xlu1 %v1355_v44, %s1486_s11  ;;  %v357_v15 = vld [vmem:[%s1594_s29 + $0x7b] sm:$0xff]  ;;  %v544_v21 = vld [vmem:[%s1979_s1 + $0x1d0] sm:$0xff]  ;;  %v543_v22 = vld [vmem:[%s1979_s1 + $0x1c8] sm:$0xff] }
  0x2b   : > { %572 = vmatprep.subr.mxu0 %v495_v50  ;;  %v546_v17 = vld [vmem:[%s1979_s1 + $0x1e0] sm:$0xff]  ;;  %v545_v19 = vld [vmem:[%s1979_s1 + $0x1d8] sm:$0xff]  ;;  %v1395_v20 = vpack.i.bf16 %v228_v14, %v357_v15  ;;  %v540_v25 = vld [vmem:[%s1979_s1 + $0x1b0] sm:$0xff] }
  0x2c   : > { %573 = vmatpush1.msra.mxu0 %v494_v51  ;;  %v542_v23 = vld [vmem:[%s1979_s1 + $0x1c0] sm:$0xff]  ;;  %v541_v24 = vld [vmem:[%s1979_s1 + $0x1b8] sm:$0xff]  ;;  %v539_v26 = vld [vmem:[%s1979_s1 + $0x1a8] sm:$0xff] }
  0x2d   : > { %574 = vmatprep.subr.mxu0 %v493_v53  ;;  %1361 = vrot.lane.b32.xlu0 %v1360_v52, %s1486_s11  ;;  %v538_v27 = vld [vmem:[%s1979_s1 + $0x1a0] sm:$0xff]  ;;  %v537_v28 = vld [vmem:[%s1979_s1 + $0x198] sm:$0xff]  ;;  %v536_v29 = vld [vmem:[%s1979_s1 + $0x190] sm:$0xff] }
  0x2e   : > { %575 = vmatpush1.msra.mxu0 %v492_v57  ;;  %1366 = vrot.lane.b32.xlu1 %v1365_v54, %s1486_s11  ;;  %v535_v30 = vld [vmem:[%s1979_s1 + $0x188] sm:$0xff]  ;;  %v534_v31 = vld [vmem:[%s1979_s1 + $0x180] sm:$0xff]  ;;  %v533_v32 = vld [vmem:[%s1979_s1 + $0x178] sm:$0xff] }
  0x2f   : > { %576 = vmatprep.subr.mxu0 %v491_v60  ;;  %v532_v33 = vld [vmem:[%s1979_s1 + $0x170] sm:$0xff]  ;;  %v531_v34 = vld [vmem:[%s1979_s1 + $0x168] sm:$0xff]  ;;  %v530_v35 = vld [vmem:[%s1979_s1 + $0x160] sm:$0xff] }
  0x30   : > { %577 = vmatpush1.msra.mxu0 %v490_v61  ;;  %v529_v36 = vld [vmem:[%s1979_s1 + $0x158] sm:$0xff]  ;;  %v528_v37 = vld [vmem:[%s1979_s1 + $0x150] sm:$0xff]  ;;  %v527_v38 = vld [vmem:[%s1979_s1 + $0x148] sm:$0xff] }
  0x31   : > { %578 = vmatprep.subr.mxu0 %v489_v63  ;;  %1371 = vrot.lane.b32.xlu0 %v1370_v62, %s1486_s11  ;;  %v526_v39 = vld [vmem:[%s1979_s1 + $0x140] sm:$0xff]  ;;  %v525_v40 = vld [vmem:[%s1979_s1 + $0x138] sm:$0xff]  ;;  %v524_v41 = vld [vmem:[%s1979_s1 + $0x130] sm:$0xff] }
  0x32   : > { %579 = vmatpush1.msra.mxu0 %v488_v3  ;;  %1376 = vrot.lane.b32.xlu1 %v1375_v0, %s1486_s11  ;;  %v523_v42 = vld [vmem:[%s1979_s1 + $0x128] sm:$0xff]  ;;  %v522_v43 = vld [vmem:[%s1979_s1 + $0x120] sm:$0xff]  ;;  %v521_v44 = vld [vmem:[%s1979_s1 + $0x118] sm:$0xff] }
  0x33   : > { %580 = vmatprep.subr.mxu0 %v487_v6  ;;  %v520_v45 = vld [vmem:[%s1979_s1 + $0x110] sm:$0xff]  ;;  %v519_v46 = vld [vmem:[%s1979_s1 + $0x108] sm:$0xff]  ;;  %v518_v47 = vld [vmem:[%s1979_s1 + $0x100] sm:$0xff] }
  0x34   : > { %581 = vmatpush1.msra.mxu0 %v486_v7  ;;  %v870_v48 = vld [vmem:[%s1980_s2 + $0x78] sm:$0xff]  ;;  %v869_v49 = vld [vmem:[%s1980_s2 + $0x70] sm:$0xff]  ;;  %v868_v50 = vld [vmem:[%s1980_s2 + $0x68] sm:$0xff] }
  0x35   : > { %582 = vmatprep.subr.mxu0 %v549_v9  ;;  %1381 = vrot.lane.b32.xlu0 %v1380_v8, %s1486_s11  ;;  %v867_v51 = vld [vmem:[%s1980_s2 + $0x60] sm:$0xff]  ;;  %v866_v52 = vld [vmem:[%s1980_s2 + $0x58] sm:$0xff]  ;;  %v865_v53 = vld [vmem:[%s1980_s2 + $0x50] sm:$0xff] }
  0x36   : > { %583 = vmatpush2.msra.mxu0 %v548_v13  ;;  %1386 = vrot.lane.b32.xlu1 %v1385_v10, %s1486_s11  ;;  %v864_v54 = vld [vmem:[%s1980_s2 + $0x48] sm:$0xff]  ;;  %v863_v55 = vld [vmem:[%s1980_s2 + $0x40] sm:$0xff]  ;;  %v862_v56 = vld [vmem:[%s1980_s2 + $0x38] sm:$0xff] }
  0x37   : > { %584 = vmatprep.subr.mxu0 %v547_v16  ;;  %1205 = vmatprep.subr.mxu1 %v870_v48  ;;  %v861_v57 = vld [vmem:[%s1980_s2 + $0x30] sm:$0xff]  ;;  %v860_v58 = vld [vmem:[%s1980_s2 + $0x28] sm:$0xff]  ;;  %v197_v61 = vld [vmem:[%s1594_s29] sm:$0xff] }
  0x38   : > { %585 = vmatpush2.msra.mxu0 %v546_v17  ;;  %1206 = vmatpush3.msra.mxu1 %v870_v48  ;;  %v326_v60 = vld [vmem:[%s1594_s29 + $0x2] sm:$0xff]  ;;  %v327_v5 = vld [vmem:[%s1594_s29 + $0xa] sm:$0xff]  ;;  %v328_v7 = vld [vmem:[%s1594_s29 + $0x12] sm:$0xff] }
  0x39   : > { %586 = vmatprep.subr.mxu0 %v545_v19  ;;  %1391 = vrot.lane.b32.xlu0 %v1390_v18, %s1486_s11  ;;  %v198_v6 = vld [vmem:[%s1594_s29 + $0x8] sm:$0xff]  ;;  %v199_v16 = vld [vmem:[%s1594_s29 + $0x10] sm:$0xff]  ;;  %v329_v18 = vld [vmem:[%s1594_s29 + $0x1a] sm:$0xff] }
  0x3a   : > { %587 = vmatpush2.msra.mxu0 %v544_v21  ;;  %1396 = vrot.lane.b32.xlu1 %v1395_v20, %s1486_s11  ;;  %s1414_s11 = scalar_lea.vmem %s1413_s27, 1024 }
  0x3b   : > { %588 = vmatprep.subr.mxu0 %v543_v22  ;;  %1207 = vmatprep.subr.mxu1 %v869_v49  ;;  %p1416_p2 = scmp.lt.s32.totalorder %s1414_s11, %s1408_s26 }
  0x3c   : > { %589 = vmatpush2.msra.mxu0 %v542_v23  ;;  %1208 = vmatpush3.msra.mxu1 %v869_v49  ;;  %v200_v23 = vld [vmem:[%s1594_s29 + $0x18] sm:$0xff] }
  0x3d   : > { %590 = vmatprep.subr.mxu0 %v541_v24  ;;  %1209 = vmatprep.subr.mxu1 %v868_v50  ;;  %p1417_p3 = por %p1416_p2, %p1415_p1 }
  0x3e   : > { %591 = vmatpush2.msra.mxu0 %v540_v25  ;;  %1210 = vmatpush3.msra.mxu1 %v868_v50  ;;  %v330_v25 = vld [vmem:[%s1594_s29 + $0x22] sm:$0xff] }
  0x3f   : > { %592 = vmatprep.subr.mxu0 %v539_v26  ;;  %1211 = vmatprep.subr.mxu1 %v867_v51  ;;  %p1418_p5 = pnand %p1417_p3, %p1411_p0 }
  0x40   : > { %593 = vmatpush2.msra.mxu0 %v538_v27  ;;  %1212 = vmatpush3.msra.mxu1 %v867_v51  ;;  %v204_v51 = vld [vmem:[%s1594_s29 + $0x38] sm:$0xff] }
  0x41   : > { %594 = vmatprep.subr.mxu0 %v537_v28  ;;  %1213 = vmatprep.subr.mxu1 %v866_v52 }
  0x42   : > { %595 = vmatpush2.msra.mxu0 %v536_v29  ;;  %1214 = vmatpush3.msra.mxu1 %v866_v52 }
  0x43   : > { %596 = vmatprep.subr.mxu0 %v535_v30  ;;  %1215 = vmatprep.subr.mxu1 %v865_v53  ;;  %v201_v30 = vld [vmem:[%s1594_s29 + $0x20] sm:$0xff] }
  0x44   : > { %597 = vmatpush2.msra.mxu0 %v534_v31  ;;  %1216 = vmatpush3.msra.mxu1 %v865_v53  ;;  %v334_v53 = vld [vmem:[%s1594_s29 + $0x42] sm:$0xff] }
  0x45   : > { %598 = vmatprep.subr.mxu0 %v533_v32  ;;  %1217 = vmatprep.subr.mxu1 %v864_v54  ;;  %v331_v32 = vld [vmem:[%s1594_s29 + $0x2a] sm:$0xff] }
  0x46   : > { %599 = vmatpush2.msra.mxu0 %v532_v33  ;;  %1218 = vmatpush3.msra.mxu1 %v864_v54 }
  0x47   : > { %600 = vmatprep.subr.mxu0 %v531_v34  ;;  %1219 = vmatprep.subr.mxu1 %v863_v55 }
  0x48   : > { %601 = vmatpush2.msra.mxu0 %v530_v35  ;;  %1220 = vmatpush3.msra.mxu1 %v863_v55 }
  0x49   : > { %602 = vmatprep.subr.mxu0 %v529_v36  ;;  %1221 = vmatprep.subr.mxu1 %v862_v56 }
  0x4a   : > { %603 = vmatpush2.msra.mxu0 %v528_v37  ;;  %1222 = vmatpush3.msra.mxu1 %v862_v56  ;;  %v202_v37 = vld [vmem:[%s1594_s29 + $0x28] sm:$0xff] }
  0x4b   : > { %604 = vmatprep.subr.mxu0 %v527_v38  ;;  %1223 = vmatprep.subr.mxu1 %v861_v57 }
  0x4c   : > { %605 = vmatpush2.msra.mxu0 %v526_v39  ;;  %1224 = vmatpush3.msra.mxu1 %v861_v57  ;;  %v332_v39 = vld [vmem:[%s1594_s29 + $0x32] sm:$0xff] }
  0x4d   : > { %606 = vmatprep.subr.mxu0 %v525_v40  ;;  %1225 = vmatprep.subr.mxu1 %v860_v58 }
  0x4e   : > { %607 = vmatpush2.msra.mxu0 %v524_v41  ;;  %1226 = vmatpush3.msra.mxu1 %v860_v58  ;;  %v205_v58 = vld [vmem:[%s1594_s29 + $0x40] sm:$0xff] }
  0x4f   : > { %608 = vmatprep.subr.mxu0 %v523_v42 }
  0x50   : > { %609 = vmatpush2.msra.mxu0 %v522_v43 }
  0x51   : > { %610 = vmatprep.subr.mxu0 %v521_v44  ;;  %v203_v44 = vld [vmem:[%s1594_s29 + $0x30] sm:$0xff] }
  0x52   : > { %611 = vmatpush2.msra.mxu0 %v520_v45 }
  0x53   : > { %612 = vmatprep.subr.mxu0 %v519_v46  ;;  %v333_v46 = vld [vmem:[%s1594_s29 + $0x3a] sm:$0xff] }
  0x54   : > { %613 = vmatpush2.msra.mxu0 %v518_v47 }
  0x8f   : > { %v1322_v59 = vpop.permute.xlu0 %1321 }
  0x90   : > { %v1324_v62 = vunpack.i.h.bf16 %v1322_v59  ;;  %v1323_v63 = vunpack.i.l.bf16 %v1322_v59  ;;  %v1332_v0 = vpop.permute.xlu1 %1331 }
  0x91   : > { %v1333_v3 = vunpack.i.l.bf16 %v1332_v0  ;;  %v1334_v11 = vunpack.i.h.bf16 %v1332_v0 }
  0x92   : > { %v422_v1 = vsel %vm293_vm0, %v326_v60, %v1323_v63  ;;  %v294_v2 = vsel %vm293_vm0, %v197_v61, %v1324_v62  ;;  %v335_v60 = vld [vmem:[%s1594_s29 + $0x4a] sm:$0xff] }
  0x93   : > { %v1327_v4 = vpop.permute.xlu0 %1326  ;;  %614 = vmatprep.mubr.f32.mxu0 %v422_v1  ;;  %v424_v15 = vsel %vm293_vm0, %v328_v7, %v1333_v3  ;;  %v296_v20 = vsel %vm293_vm0, %v199_v16, %v1334_v11  ;;  %v206_v1 = vld [vmem:[%s1594_s29 + $0x48] sm:$0xff]  ;;  %v336_v3 = vld [vmem:[%s1594_s29 + $0x52] sm:$0xff] }
  0x94   : > { %v1329_v8 = vunpack.i.h.bf16 %v1327_v4  ;;  %v1328_v9 = vunpack.i.l.bf16 %v1327_v4  ;;  %615 = vmatmul.mubr.f32.vlgmr.msra.gmra.mxu0 %v294_v2  ;;  %v1337_v10 = vpop.permute.xlu1 %1336 }
  0x95   : > { %v1338_v14 = vunpack.i.l.bf16 %v1337_v10  ;;  %v1339_v19 = vunpack.i.h.bf16 %v1337_v10  ;;  %v337_v10 = vld [vmem:[%s1594_s29 + $0x5a] sm:$0xff] }
  0x96   : > { %v423_v12 = vsel %vm293_vm0, %v327_v5, %v1328_v9  ;;  %v295_v13 = vsel %vm293_vm0, %v198_v6, %v1329_v8  ;;  %v207_v8 = vld [vmem:[%s1594_s29 + $0x50] sm:$0xff] }
  0x97   : > { %620 = vmatprep.mubr.f32.mxu0 %v423_v12  ;;  %v1342_v17 = vpop.permute.xlu0 %1341  ;;  %v425_v22 = vsel %vm293_vm0, %v329_v18, %v1338_v14  ;;  %v297_v27 = vsel %vm293_vm0, %v200_v23, %v1339_v19 }
  0x98   : > { %621 = vmatmul.mubr.f32.gmra.mxu0 %v295_v13  ;;  %v1343_v21 = vunpack.i.l.bf16 %v1342_v17  ;;  %v1347_v24 = vpop.permute.xlu1 %1346  ;;  %v1344_v26 = vunpack.i.h.bf16 %v1342_v17  ;;  %v338_v17 = vld [vmem:[%s1594_s29 + $0x62] sm:$0xff] }
  0x99   : > { %626 = vmatprep.mubr.f32.mxu0 %v424_v15  ;;  %v1348_v28 = vunpack.i.l.bf16 %v1347_v24  ;;  %v1349_v33 = vunpack.i.h.bf16 %v1347_v24  ;;  %v208_v15 = vld [vmem:[%s1594_s29 + $0x58] sm:$0xff]  ;;  %v339_v24 = vld [vmem:[%s1594_s29 + $0x6a] sm:$0xff] }
  0x9a   : > { %v426_v29 = vsel %vm293_vm0, %v330_v25, %v1343_v21  ;;  %v298_v34 = vsel %vm293_vm0, %v201_v30, %v1344_v26 }
  0x9b   : > { %v1352_v31 = vpop.permute.xlu0 %1351  ;;  %v427_v36 = vsel %vm293_vm0, %v331_v32, %v1348_v28  ;;  %v299_v41 = vsel %vm293_vm0, %v202_v37, %v1349_v33  ;;  %v341_v37 = vld [vmem:[%s1594_s29 + $0x7a] sm:$0xff] }
  0x9c   : > { %627 = vmatmul.mubr.f32.gmra.mxu0 %v296_v20  ;;  %v1353_v35 = vunpack.i.l.bf16 %v1352_v31  ;;  %v1357_v38 = vpop.permute.xlu1 %1356  ;;  %v1354_v40 = vunpack.i.h.bf16 %v1352_v31  ;;  %v340_v31 = vld [vmem:[%s1594_s29 + $0x72] sm:$0xff] }
  0x9d   : > { %632 = vmatprep.mubr.f32.mxu0 %v425_v22  ;;  %v1358_v42 = vunpack.i.l.bf16 %v1357_v38  ;;  %v1359_v47 = vunpack.i.h.bf16 %v1357_v38  ;;  %v209_v22 = vld [vmem:[%s1594_s29 + $0x60] sm:$0xff] }
  0x9e   : > { %v428_v43 = vsel %vm293_vm0, %v332_v39, %v1353_v35  ;;  %v300_v48 = vsel %vm293_vm0, %v203_v44, %v1354_v40  ;;  %v858_v44 = vld [vmem:[%s1980_s2 + $0x18] sm:$0xff] }
  0x9f   : > { %v1362_v45 = vpop.permute.xlu0 %1361  ;;  %v429_v50 = vsel %vm293_vm0, %v333_v46, %v1358_v42  ;;  %v301_v55 = vsel %vm293_vm0, %v204_v51, %v1359_v47  ;;  %v856_v46 = vld [vmem:[%s1980_s2 + $0x8] sm:$0xff]  ;;  %v855_v47 = vld [vmem:[%s1980_s2] sm:$0xff] }
  0xa0   : > { %633 = vmatmul.mubr.f32.gmra.mxu0 %v297_v27  ;;  %v1363_v49 = vunpack.i.l.bf16 %v1362_v45  ;;  %v1367_v52 = vpop.permute.xlu1 %1366  ;;  %v1364_v54 = vunpack.i.h.bf16 %v1362_v45  ;;  %v857_v45 = vld [vmem:[%s1980_s2 + $0x10] sm:$0xff] }
  0xa1   : > { %638 = vmatprep.mubr.f32.mxu0 %v426_v29  ;;  %v1368_v56 = vunpack.i.l.bf16 %v1367_v52  ;;  %v1369_v61 = vunpack.i.h.bf16 %v1367_v52  ;;  %v210_v29 = vld [vmem:[%s1594_s29 + $0x68] sm:$0xff] }
  0xa2   : > { %v430_v57 = vsel %vm293_vm0, %v334_v53, %v1363_v49  ;;  %v302_v62 = vsel %vm293_vm0, %v205_v58, %v1364_v54 }
  0xa3   : > { %v1372_v59 = vpop.permute.xlu0 %1371  ;;  %v431_v0 = vsel %vm293_vm0, %v335_v60, %v1368_v56  ;;  %v303_v5 = vsel %vm293_vm0, %v206_v1, %v1369_v61 }
  0xa4   : > { %639 = vmatmul.mubr.f32.gmra.mxu0 %v298_v34  ;;  %v1373_v63 = vunpack.i.l.bf16 %v1372_v59  ;;  %v1377_v2 = vpop.permute.xlu1 %1376  ;;  %v1374_v4 = vunpack.i.h.bf16 %v1372_v59 }
  0xa5   : > { %644 = vmatprep.mubr.f32.mxu0 %v427_v36  ;;  %v1378_v6 = vunpack.i.l.bf16 %v1377_v2  ;;  %v1379_v11 = vunpack.i.h.bf16 %v1377_v2  ;;  %v211_v36 = vld [vmem:[%s1594_s29 + $0x70] sm:$0xff] }
  0xa6   : > { %v432_v7 = vsel %vm293_vm0, %v336_v3, %v1373_v63  ;;  %v304_v12 = vsel %vm293_vm0, %v207_v8, %v1374_v4 }
  0xa7   : > { %v1382_v9 = vpop.permute.xlu0 %1381  ;;  %v433_v14 = vsel %vm293_vm0, %v337_v10, %v1378_v6  ;;  %v305_v19 = vsel %vm293_vm0, %v208_v15, %v1379_v11 }
  0xa8   : > { %645 = vmatmul.mubr.f32.gmra.mxu0 %v299_v41  ;;  %v1383_v13 = vunpack.i.l.bf16 %v1382_v9  ;;  %v1387_v16 = vpop.permute.xlu1 %1386  ;;  %v1384_v18 = vunpack.i.h.bf16 %v1382_v9  ;;  %v212_v41 = vld [vmem:[%s1594_s29 + $0x78] sm:$0xff] }
  0xa9   : > { %650 = vmatprep.mubr.f32.mxu0 %v428_v43  ;;  %v1388_v20 = vunpack.i.l.bf16 %v1387_v16  ;;  %v1389_v25 = vunpack.i.h.bf16 %v1387_v16  ;;  %v859_v43 = vld [vmem:[%s1980_s2 + $0x20] sm:$0xff] }
  0xaa   : > { %v434_v21 = vsel %vm293_vm0, %v338_v17, %v1383_v13  ;;  %v306_v26 = vsel %vm293_vm0, %v209_v22, %v1384_v18  ;;  %1227 = vmatprep.subr.mxu1 %v859_v43 }
  0xab   : > { %v1392_v23 = vpop.permute.xlu0 %1391  ;;  %v435_v28 = vsel %vm293_vm0, %v339_v24, %v1388_v20  ;;  %v307_v33 = vsel %vm293_vm0, %v210_v29, %v1389_v25  ;;  %1228 = vmatpush3.msra.mxu1 %v859_v43 }
  0xac   : > { %651 = vmatmul.mubr.f32.gmra.mxu0 %v300_v48  ;;  %v1393_v27 = vunpack.i.l.bf16 %v1392_v23  ;;  %v1397_v30 = vpop.permute.xlu1 %1396  ;;  %v1394_v32 = vunpack.i.h.bf16 %v1392_v23  ;;  %1229 = vmatprep.subr.mxu1 %v858_v44 }
  0xad   : > { %656 = vmatprep.mubr.f32.mxu0 %v429_v50  ;;  %v1398_v34 = vunpack.i.l.bf16 %v1397_v30  ;;  %v1399_v38 = vunpack.i.h.bf16 %v1397_v30  ;;  %1230 = vmatpush3.msra.mxu1 %v858_v44 }
  0xae   : > { %v436_v35 = vsel %vm293_vm0, %v340_v31, %v1393_v27  ;;  %v308_v39 = vsel %vm293_vm0, %v211_v36, %v1394_v32  ;;  %1231 = vmatprep.subr.mxu1 %v857_v45 }
  0xaf   : > { %v437_v40 = vsel %vm293_vm0, %v341_v37, %v1398_v34  ;;  %v309_v42 = vsel %vm293_vm0, %v212_v41, %v1399_v38  ;;  %1232 = vmatpush3.msra.mxu1 %v857_v45 }
  0xb0   : > { %657 = vmatmul.mubr.f32.gmra.mxu0 %v301_v55  ;;  %1233 = vmatprep.subr.mxu1 %v856_v46 }
  0xb1   : > { %662 = vmatprep.mubr.f32.mxu0 %v430_v57  ;;  %1234 = vmatpush3.msra.mxu1 %v856_v46 }
  0xb2   : > { %1235 = vmatprep.subr.mxu1 %v855_v47 }
  0xb3   : > { %1236 = vmatpush3.msra.mxu1 %v855_v47 }
  0xb4   : > { %663 = vmatmul.mubr.f32.gmra.mxu0 %v302_v62 }
  0xb5   : > { %668 = vmatprep.mubr.f32.mxu0 %v431_v0 }
  0xb8   : > { %669 = vmatmul.mubr.f32.gmra.mxu0 %v303_v5 }
  0xb9   : > { %674 = vmatprep.mubr.f32.mxu0 %v432_v7 }
  0xbc   : > { %675 = vmatmul.mubr.f32.gmra.mxu0 %v304_v12 }
  0xbd   : > { %680 = vmatprep.mubr.f32.mxu0 %v433_v14 }
  0xc0   : > { %681 = vmatmul.mubr.f32.gmra.mxu0 %v305_v19 }
  0xc1   : > { %686 = vmatprep.mubr.f32.mxu0 %v434_v21 }
  0xc4   : > { %687 = vmatmul.mubr.f32.gmra.mxu0 %v306_v26 }
  0xc5   : > { %692 = vmatprep.mubr.f32.mxu0 %v435_v28 }
  0xc8   : > { %693 = vmatmul.mubr.f32.gmra.mxu0 %v307_v33 }
  0xc9   : > { %698 = vmatprep.mubr.f32.mxu0 %v436_v35 }
  0xcc   : > { %699 = vmatmul.mubr.f32.gmra.mxu0 %v308_v39 }
  0xcd   : > { %704 = vmatprep.mubr.f32.mxu0 %v437_v40 }
  0xd0   : > { %705 = vmatmul.mubr.f32.gmra.mxu0 %v309_v42 }
 0x154   : > { %v616_v48 = vpop.f32.mrf.mxu0 }
 0x155   : > { %v775_v50 = vmul.f32 %v616_v48, %v616_v48 }
 0x156   : > { %v618_v49 = vpop.f32.mrf.mxu0 }
 0x157   : > { %v791_v51 = vmul.f32 %v618_v49, %v618_v49 }
 0x158   : > { %v622_v52 = vpop.f32.mrf.mxu0 }
 0x159   : > { %v807_v53 = vadd.f32 %v791_v51, %v775_v50  ;;  %v776_v55 = vmul.f32 %v622_v52, %v622_v52 }
 0x15a   : > { %v624_v54 = vpop.f32.mrf.mxu0 }
 0x15b   : > { %v792_v56 = vmul.f32 %v624_v54, %v624_v54  ;;  %1237 = vmatprep.mubr.f32.mxu1 %v807_v53 }
 0x15c   : > { %v628_v57 = vpop.f32.mrf.mxu0 }
 0x15d   : > { %v808_v58 = vadd.f32 %v792_v56, %v776_v55  ;;  %v777_v60 = vmul.f32 %v628_v57, %v628_v57 }
 0x15e   : > { %v630_v59 = vpop.f32.mrf.mxu0 }
 0x15f   : > { %v793_v61 = vmul.f32 %v630_v59, %v630_v59  ;;  %1238 = vmatmul.mubr.f32.vlgmr.msra.gmra.mxu1 %v808_v58 }
 0x160   : > { %v634_v62 = vpop.f32.mrf.mxu0 }
 0x161   : > { %v809_v63 = vadd.f32 %v793_v61, %v777_v60  ;;  %v778_v1 = vmul.f32 %v634_v62, %v634_v62 }
 0x162   : > { %v636_v0 = vpop.f32.mrf.mxu0 }
 0x163   : > { %v794_v2 = vmul.f32 %v636_v0, %v636_v0  ;;  %1240 = vmatprep.mubr.f32.mxu1 %v809_v63 }
 0x164   : > { %v640_v3 = vpop.f32.mrf.mxu0 }
 0x165   : > { %v810_v4 = vadd.f32 %v794_v2, %v778_v1  ;;  %v779_v6 = vmul.f32 %v640_v3, %v640_v3 }
 0x166   : > { %v642_v5 = vpop.f32.mrf.mxu0 }
 0x167   : > { %v795_v7 = vmul.f32 %v642_v5, %v642_v5  ;;  %1241 = vmatmul.mubr.f32.gmra.mxu1 %v810_v4 }
 0x168   : > { %v646_v8 = vpop.f32.mrf.mxu0 }
 0x169   : > { %v811_v9 = vadd.f32 %v795_v7, %v779_v6  ;;  %v780_v11 = vmul.f32 %v646_v8, %v646_v8 }
 0x16a   : > { %v648_v10 = vpop.f32.mrf.mxu0 }
 0x16b   : > { %v796_v12 = vmul.f32 %v648_v10, %v648_v10  ;;  %1243 = vmatprep.mubr.f32.mxu1 %v811_v9 }
 0x16c   : > { %v652_v13 = vpop.f32.mrf.mxu0 }
 0x16d   : > { %v812_v14 = vadd.f32 %v796_v12, %v780_v11  ;;  %v781_v16 = vmul.f32 %v652_v13, %v652_v13 }
 0x16e   : > { %v654_v15 = vpop.f32.mrf.mxu0 }
 0x16f   : > { %v797_v17 = vmul.f32 %v654_v15, %v654_v15  ;;  %1244 = vmatmul.mubr.f32.gmra.mxu1 %v812_v14 }
 0x170   : > { %v658_v18 = vpop.f32.mrf.mxu0 }
 0x171   : > { %v813_v19 = vadd.f32 %v797_v17, %v781_v16  ;;  %v782_v21 = vmul.f32 %v658_v18, %v658_v18 }
 0x172   : > { %v660_v20 = vpop.f32.mrf.mxu0 }
 0x173   : > { %v798_v22 = vmul.f32 %v660_v20, %v660_v20  ;;  %1246 = vmatprep.mubr.f32.mxu1 %v813_v19 }
 0x174   : > { %v664_v23 = vpop.f32.mrf.mxu0 }
 0x175   : > { %v814_v24 = vadd.f32 %v798_v22, %v782_v21  ;;  %v783_v26 = vmul.f32 %v664_v23, %v664_v23 }
 0x176   : > { %v666_v25 = vpop.f32.mrf.mxu0 }
 0x177   : > { %v799_v27 = vmul.f32 %v666_v25, %v666_v25  ;;  %1247 = vmatmul.mubr.f32.gmra.mxu1 %v814_v24 }
 0x178   : > { %v670_v28 = vpop.f32.mrf.mxu0 }
 0x179   : > { %v815_v29 = vadd.f32 %v799_v27, %v783_v26  ;;  %v784_v31 = vmul.f32 %v670_v28, %v670_v28 }
 0x17a   : > { %v672_v30 = vpop.f32.mrf.mxu0 }
 0x17b   : > { %v800_v32 = vmul.f32 %v672_v30, %v672_v30  ;;  %1249 = vmatprep.mubr.f32.mxu1 %v815_v29 }
 0x17c   : > { %v676_v33 = vpop.f32.mrf.mxu0 }
 0x17d   : > { %v816_v34 = vadd.f32 %v800_v32, %v784_v31  ;;  %v785_v36 = vmul.f32 %v676_v33, %v676_v33 }
 0x17e   : > { %v678_v35 = vpop.f32.mrf.mxu0 }
 0x17f   : > { %v801_v37 = vmul.f32 %v678_v35, %v678_v35  ;;  %1250 = vmatmul.mubr.f32.gmra.mxu1 %v816_v34 }
 0x180   : > { %v682_v38 = vpop.f32.mrf.mxu0 }
 0x181   : > { %v817_v39 = vadd.f32 %v801_v37, %v785_v36  ;;  %v786_v41 = vmul.f32 %v682_v38, %v682_v38 }
 0x182   : > { %v684_v40 = vpop.f32.mrf.mxu0 }
 0x183   : > { %v802_v42 = vmul.f32 %v684_v40, %v684_v40  ;;  %1252 = vmatprep.mubr.f32.mxu1 %v817_v39 }
 0x184   : > { %v688_v43 = vpop.f32.mrf.mxu0 }
 0x185   : > { %v818_v44 = vadd.f32 %v802_v42, %v786_v41  ;;  %v787_v46 = vmul.f32 %v688_v43, %v688_v43 }
 0x186   : > { %v690_v45 = vpop.f32.mrf.mxu0 }
 0x187   : > { %v803_v47 = vmul.f32 %v690_v45, %v690_v45  ;;  %1253 = vmatmul.mubr.f32.gmra.mxu1 %v818_v44 }
 0x188   : > { %v694_v48 = vpop.f32.mrf.mxu0 }
 0x189   : > { %v819_v49 = vadd.f32 %v803_v47, %v787_v46  ;;  %v788_v51 = vmul.f32 %v694_v48, %v694_v48 }
 0x18a   : > { %v696_v50 = vpop.f32.mrf.mxu0 }
 0x18b   : > { %v804_v52 = vmul.f32 %v696_v50, %v696_v50  ;;  %1255 = vmatprep.mubr.f32.mxu1 %v819_v49 }
 0x18c   : > { %v700_v53 = vpop.f32.mrf.mxu0 }
 0x18d   : > { %v820_v54 = vadd.f32 %v804_v52, %v788_v51  ;;  %v789_v56 = vmul.f32 %v700_v53, %v700_v53 }
 0x18e   : > { %v702_v55 = vpop.f32.mrf.mxu0 }
 0x18f   : > { %v805_v57 = vmul.f32 %v702_v55, %v702_v55  ;;  %1256 = vmatmul.mubr.f32.gmra.mxu1 %v820_v54 }
 0x190   : > { %v706_v58 = vpop.f32.mrf.mxu0 }
 0x191   : > { %v821_v59 = vadd.f32 %v805_v57, %v789_v56  ;;  %v790_v61 = vmul.f32 %v706_v58, %v706_v58 }
 0x192   : > { %v708_v60 = vpop.f32.mrf.mxu0 }
 0x193   : > { %v806_v62 = vmul.f32 %v708_v60, %v708_v60  ;;  %1258 = vmatprep.mubr.f32.mxu1 %v821_v59 }
 0x195   : > { %v822_v63 = vadd.f32 %v806_v62, %v790_v61 }
 0x197   : > { %1259 = vmatmul.mubr.f32.gmra.mxu1 %v822_v63 }
 0x21f   : > { %v1239_v0 = vpop.f32.mrf.mxu1 }
 0x221   : > { %v937_v1 = vpop.f32.mrf.mxu1 }
 0x222   : > { %1016 = vxpose.xlu0.b32.start [1/16] (narrow) %v937_v1, 32 }
 0x226   : > { %1017 = vxpose.xlu0.b32.cont [2/16] (narrow) %v1239_v0, 32 }
 0x227   : > { %v1242_v2 = vpop.f32.mrf.mxu1 }
 0x229   : > { %v947_v3 = vpop.f32.mrf.mxu1 }
 0x22a   : > { %1018 = vxpose.xlu0.b32.cont [3/16] (narrow) %v947_v3, 32 }
 0x22e   : > { %1019 = vxpose.xlu0.b32.cont [4/16] (narrow) %v1242_v2, 32 }
 0x22f   : > { %v1245_v4 = vpop.f32.mrf.mxu1 }
 0x231   : > { %v957_v5 = vpop.f32.mrf.mxu1 }
 0x232   : > { %1020 = vxpose.xlu0.b32.cont [5/16] (narrow) %v957_v5, 32 }
 0x236   : > { %1021 = vxpose.xlu0.b32.cont [6/16] (narrow) %v1245_v4, 32 }
 0x237   : > { %v1248_v6 = vpop.f32.mrf.mxu1 }
 0x239   : > { %v967_v7 = vpop.f32.mrf.mxu1 }
 0x23a   : > { %1022 = vxpose.xlu0.b32.cont [7/16] (narrow) %v967_v7, 32 }
 0x23e   : > { %1023 = vxpose.xlu0.b32.cont [8/16] (narrow) %v1248_v6, 32 }
 0x23f   : > { %v1251_v8 = vpop.f32.mrf.mxu1 }
 0x241   : > { %v977_v9 = vpop.f32.mrf.mxu1 }
 0x242   : > { %1024 = vxpose.xlu0.b32.cont [9/16] (narrow) %v977_v9, 32 }
 0x246   : > { %1025 = vxpose.xlu0.b32.cont [10/16] (narrow) %v1251_v8, 32 }
 0x247   : > { %v1254_v10 = vpop.f32.mrf.mxu1 }
 0x249   : > { %v987_v11 = vpop.f32.mrf.mxu1 }
 0x24a   : > { %1026 = vxpose.xlu0.b32.cont [11/16] (narrow) %v987_v11, 32 }
 0x24e   : > { %1027 = vxpose.xlu0.b32.cont [12/16] (narrow) %v1254_v10, 32 }
 0x24f   : > { %v1257_v12 = vpop.f32.mrf.mxu1 }
 0x251   : > { %v997_v13 = vpop.f32.mrf.mxu1 }
 0x252   : > { %1028 = vxpose.xlu0.b32.cont [13/16] (narrow) %v997_v13, 32 }
 0x256   : > { %1029 = vxpose.xlu0.b32.cont [14/16] (narrow) %v1257_v12, 32 }
 0x257   : > { %v1260_v14 = vpop.f32.mrf.mxu1 }
 0x259   : > { %v1007_v15 = vpop.f32.mrf.mxu1 }
 0x25a   : > { %1030 = vxpose.xlu0.b32.cont [15/16] (narrow) %v1007_v15, 32 }
 0x25e   : > { %1031 = vxpose.xlu0.b32.end [16/16] (narrow) %v1260_v14, 32 }
 0x29e   : > { %v1032_v16 = vpop.trf.xlu0 }
 0x29f   : > { %v1048_v17 = vmax.f32 %v1032_v16, 1e-05 }
 0x2a1   : > { %1400 = vlog2.f32 %v1048_v17 }
 0x2a2   : > { %v1033_v18 = vpop.trf.xlu0 }
 0x2a3   : > { %v1049_v19 = vmax.f32 %v1033_v18, 1e-05 }
 0x2a5   : > { %1402 = vlog2.f32 %v1049_v19 }
 0x2a6   : > { %v1034_v20 = vpop.trf.xlu0 }
 0x2a7   : > { %v1050_v21 = vmax.f32 %v1034_v20, 1e-05 }
 0x2a9   : > { %1404 = vlog2.f32 %v1050_v21 }
 0x2aa   : > { %v1035_v22 = vpop.trf.xlu0 }
 0x2ab   : > { %v1051_v23 = vmax.f32 %v1035_v22, 1e-05 }
 0x2ad   : > { %1406 = vlog2.f32 %v1051_v23 }
 0x2ae   : > { %v1401_v24 = vpop.eup %1400 }
 0x2af   : > { %v1053_v25 = vmul.f32 0.6931472, %v1401_v24 }
 0x2b1   : > { %1060 = vst [vmem:[%s187_s8] sm:$0xff] %v1053_v25 }
 0x2b2   : > { %v1403_v26 = vpop.eup %1402 }
 0x2b3   : > { %v1055_v27 = vmul.f32 0.6931472, %v1403_v26 }
 0x2b5   : > { %1061 = vst [vmem:[%s187_s8 + $0x8] sm:$0xff] %v1055_v27 }
 0x2b6   : > { %v1405_v28 = vpop.eup %1404 }
 0x2b7   : > { %v1057_v29 = vmul.f32 0.6931472, %v1405_v28 }
 0x2b9   : > { %1062 = vst [vmem:[%s187_s8 + $0x10] sm:$0xff] %v1057_v29 }
 0x2ba   : > { %v1407_v30 = vpop.eup %1406 }
 0x2bb   : > { %v1059_v31 = vmul.f32 0.6931472, %v1407_v30 }
 0x2bd   : > { %1063 = vst [vmem:[%s187_s8 + $0x18] sm:$0xff] %v1059_v31 }
 0x2be   : > { %1421 = shalt.err (!%p1418_p5)
}
 0x2bf   : > { %s1422_s28 = scalar_lea.hbm %s1931_s21, 512  ;;  %s1426_s4 = scalar_lea.hbm %s1981_s3, 1024 }
 0x2c0   : > { %p1423_p6 = scmp.ne.s32.totalorder %s1931_s21, %s1422_s28  ;;  %p1427_p10 = scmp.lt.s32.totalorder %s1931_s21, %s1981_s3 }
 0x2c1   : > { %p1428_p11 = scmp.lt.s32.totalorder %s1426_s4, %s1422_s28 }
 0x2c2   : > { %p1424_p7 = pnand %p1423_p6, %p1550_p4 }
 0x2c3   : > { %p1429_p12 = por %p1428_p11, %p1427_p10 }
 0x2c4   : > { %p1425_p9 = pneg %p1424_p7 }
 0x2c6   : > { %p1430_p13 = pnand %p1429_p12, %p1425_p9 }
 0x2c8   : > { %1433 = shalt.err (!%p1430_p13)
}
 0x2c9   : > { %s1488_s7 = smov 128   ;;  %s1489_s8 = smov 8  }
 0x2ca   : > { %1262 = dma.vmem_to_hbm [thread:$0]  (%p1550_p4), %s1926_s9, 512, %s1931_s21, %s1933_s23, %s1488_s7, %s1488_s7, %s1489_s8  }
 0x2cb PF: > { %p1268_p0 = scmp.ge.s32.totalorder %s1484_s17, 2  ;;  %s1094_s10 = sand.u32 1, %s1464_s12  }
 0x2cc   : > { %s1095_s18 = scalar_lea.sflag [#allocation6], %s1094_s10 }
 0x2cd   : > { %p1265_p1 = pnand %p1268_p0, %p1557_p8 }
 0x2cf   : > { %p1266_p2 = pneg %p1265_p1 }
 0x2d1   : > { %1459 = dma.done.wait (%p1266_p2), %s1095_s18, 512  }
 0x2d2   : > { %1461 = vsyncadd (%p1266_p2), %s1095_s18, 4294966784  ;;  %s16_s17 = sadd.s32 1, %s1484_s17   ;;  %s1984_s12 = smov %s1468_s13 }
 0x2d3   : > { %p13_p3 = scmp.ge.s32.totalorder %s16_s17, 4   ;;  %s1985_s13 = smov %s1472_s14 }
 0x2d4   : > { %s1986_s14 = smov %s1563_s25  ;;  %s1987_s15 = smov %s1480_s16 }
 0x2d5   : > { %s1988_s16 = smov %s1990_s20  ;;  %15 = sbr.rel (!%p13_p3) target bundleno = 4 (0x4), region = 67 }
 0x2da   :  { %1100 = vsyncpa [#allocation6], 1 }
 0x2db   :  { %1102 = vsyncpa [#allocation6 + $0x1], 1 }

</bundles_post_ra>
